<compile_context>
chip_gen: v6e
topology: v6e:2x2x1
jax: 0.10.0
libtpu: 0.0.40
codegen_flags: <defaults>
</compile_context>

<pallas_src>
import functools

import jax
import jax.numpy as jnp
from jax.experimental import pallas as pl
from jax.experimental.pallas import tpu as pltpu

# ------------------------------------------------------------------ config ---
PRIMITIVES = ["none", "skip_connect", "relu", "tanh"]
NUM_OPS = len(PRIMITIVES)
STEPS = 4                      # Network(..., steps=4)
LAYERS = 2                     # small but >1 so the s0/s1 shuffle is exercised
K_EDGES = sum(2 + i for i in range(STEPS))   # 14 mixed-op edges per cell

EMB_DIM = 32
BATCH = 8
SIZES = (256, 16, 256)         # (n_entities, n_relations, n_entities)
INIT_SIZE = 0.001


# ----------------------------------------------------------- query kernel ---
def _query_kernel(w_ref, lhs_ref, rel_ref, pwt_ref, pb_ref, q_ref, *,
                  layers, steps, num_ops):
    """DARTS cell stack + projection + relu on the (B, D) query block.

    Runs exactly once per forward (B*D is tiny) so the per-entity-tile score
    kernel below never recomputes the cell stack.

    w_ref   : SMEM (K_EDGES*num_ops,) softmaxed arch weights, flattened 1D
              (avoids the 2D SMEM (16,128)-word padding) -- scalar reads
    lhs_ref : VMEM (B, D) float32
    rel_ref : VMEM (B, D) float32
    pwt_ref : VMEM (D, D) projection weight, pre-transposed (y = x @ W^T + b)
    pb_ref  : VMEM (1, D) projection bias
    q_ref   : VMEM (B, D) float32 output query block
    """
    s0 = lhs_ref[...]
    s1 = rel_ref[...]

    def pack(h):
        # Hoist relu/tanh once per state; each state feeds up to `steps` edges.
        return (h, jnp.maximum(h, 0.0), jnp.tanh(h))

    def mixed(hp, edge):
        # PRIMITIVES = ['none', 'skip_connect', 'relu', 'tanh']
        h, r, t = hp
        base = edge * num_ops
        return w_ref[base + 1] * h + w_ref[base + 2] * r + w_ref[base + 3] * t

    for _ in range(layers):                       # statically unrolled
        raw = [s0, s1]
        packed = [pack(s0), pack(s1)]
        offset = 0
        for i in range(steps):
            s = None
            for j in range(len(packed)):
                c = mixed(packed[j], offset + j)
                s = c if s is None else s + c
            offset += len(packed)
            raw.append(s)
            if i < steps - 1:                     # last state never feeds an edge
                packed.append(pack(s))
        cell_out = raw[-steps]
        for extra in raw[-steps + 1:]:
            cell_out = cell_out + extra           # sum of last `steps` states
        s0, s1 = s1, cell_out

    # projection: y = s1 @ W^T + b (W^T precomputed), relu; dropout = identity.
    q = jnp.dot(s1, pwt_ref[...], preferred_element_type=jnp.float32)
    q_ref[...] = jnp.maximum(q + pb_ref[...], 0.0)


# ----------------------------------------------------------- score kernel ---
def _score_kernel(q_ref, e_ref, out_ref):
    """One (B, TN) score tile: q @ E_tile.

    E is streamed bf16 (halves the dominant HBM stream); q stays f32 so the
    only precision loss is the bf16 entity cast.  Accumulation is f32 on the
    MXU; the extra MXU passes are free since this pass is HBM-bandwidth bound.
    """
    out_ref[...] = jnp.dot(q_ref[...], e_ref[...].astype(jnp.float32),
                           preferred_element_type=jnp.float32)


# ---------------------------------------------------------------- helpers ---
def _round_up(x, m):
    return ((x + m - 1) // m) * m


def _pick_entity_tile(n128, batch, d, *, max_tn=32768,
                      vmem_budget=12 * 1024 * 1024):
    """Largest 128-multiple entity tile fitting a double-buffered VMEM budget.

    Small tables (<= cap) get a single fully-resident tile (no pipeline churn);
    large tables get big tiles so the ~0.35us/step overhead amortizes and the
    score pass runs near the HBM roofline.
    """
    # bytes per entity column: 2x-buffered bf16 E tile + 2x-buffered f32 out tile
    per_col = 2 * (d * 2) + 2 * (batch * 4)
    cap = max(128, min(max_tn, (vmem_budget // per_col) // 128 * 128))
    return n128 if n128 <= cap else cap


def prepare_params(params, *, batch=BATCH, max_tn=32768):
    """One-time parameter prep, hoisted out of the per-call jitted forward:
       - entity table pre-transposed to lane-dense (D, N_pad), cast to bf16
         and zero-padded to a multiple of the entity tile,
       - projection weight pre-transposed,
       - softmax(alphas) precomputed and flattened for cheap SMEM scalar reads.
    Returns (arrays, meta) with meta holding the static tile size / entity count.
    """
    ent = jnp.asarray(params["ent_emb"], jnp.float32)
    n, d = ent.shape
    n128 = _round_up(n, 128)
    tn = _pick_entity_tile(n128, batch, d, max_tn=max_tn)
    n_pad = _round_up(n128, tn)

    ent_t = jnp.zeros((d, n_pad), jnp.bfloat16)
    ent_t = ent_t.at[:, :n].set(ent.T.astype(jnp.bfloat16))

    arrays = {
        "ent_emb": ent,
        "rel_emb": jnp.asarray(params["rel_emb"], jnp.float32),
        "ent_t": ent_t,
        "pw_t": jnp.asarray(params["proj_w"], jnp.float32).T,
        "proj_b": jnp.asarray(params["proj_b"], jnp.float32).reshape(1, -1),
        "arch_w": jax.nn.softmax(
            jnp.asarray(params["alphas_normal"], jnp.float32), axis=-1
        ).reshape(-1),
    }
    meta = {"tile_n": int(tn), "n_entities": int(n)}
    return arrays, meta


# ------------------------------------------------------------------ forward -
def make_network_forward(meta, *, layers=LAYERS, steps=STEPS):
    """Builds the jitted forward; tile size / entity count are baked statically."""
    tn = meta["tile_n"]
    n_ent = meta["n_entities"]

    def forward(arrays, x):
        ent_emb = arrays["ent_emb"]
        lhs = jnp.take(ent_emb, x[:, 0], axis=0)
        rel = jnp.take(arrays["rel_emb"], x[:, 1], axis=0)
        rhs = jnp.take(ent_emb, x[:, 2], axis=0)

        b, d = lhs.shape
        n_pad = arrays["ent_t"].shape[1]

        # 1) tiny single-shot kernel: cell stack + projection + relu -> (B, D) q
        q = pl.pallas_call(
            functools.partial(_query_kernel, layers=layers, steps=steps,
                              num_ops=NUM_OPS),
            out_shape=jax.ShapeDtypeStruct((b, d), jnp.float32),
            in_specs=[
                pl.BlockSpec(memory_space=pltpu.MemorySpace.SMEM),  # arch weights
                pl.BlockSpec(memory_space=pltpu.MemorySpace.VMEM),  # lhs
                pl.BlockSpec(memory_space=pltpu.MemorySpace.VMEM),  # rel
                pl.BlockSpec(memory_space=pltpu.MemorySpace.VMEM),  # proj W^T
                pl.BlockSpec(memory_space=pltpu.MemorySpace.VMEM),  # proj bias
            ],
            out_specs=pl.BlockSpec(memory_space=pltpu.MemorySpace.VMEM),
        )(arrays["arch_w"], lhs, rel, arrays["pw_t"], arrays["proj_b"])

        # 2) HBM-bound score pass: stream (D, N_pad) bf16 entity tiles; one
        #    lane-dense (B, tn) score tile per grid step, grid sharded across
        #    TensorCores on v7x via the parallel axis.
        scores_pad = pl.pallas_call(
            _score_kernel,
            out_shape=jax.ShapeDtypeStruct((b, n_pad), jnp.float32),
            grid_spec=pltpu.PrefetchScalarGridSpec(
                num_scalar_prefetch=0,
                grid=(n_pad // tn,),
                in_specs=[
                    pl.BlockSpec((b, d), lambda i: (0, 0)),    # q (resident)
                    pl.BlockSpec((d, tn), lambda i: (0, i)),   # E tile
                ],
                out_specs=pl.BlockSpec((b, tn), lambda i: (0, i)),
            ),
            compiler_params=pltpu.CompilerParams(
                dimension_semantics=("parallel",)),
        )(q, arrays["ent_t"])

        scores = scores_pad[:, :n_ent] if n_pad != n_ent else scores_pad
        return scores, (lhs, rel, rhs)

    return jax.jit(forward)


# --------------------------------------------------------- pure-JAX reference
def reference_forward(params, x):
    ent_emb, rel_emb = params["ent_emb"], params["rel_emb"]
    lhs = ent_emb[x[:, 0]]
    rel = rel_emb[x[:, 1]]
    W = jax.nn.softmax(params["alphas_normal"], axis=-1)

    def mixed(h, w):
        return w[1] * h + w[2] * jnp.maximum(h, 0.0) + w[3] * jnp.tanh(h)

    s0, s1 = lhs, rel
    for _ in range(LAYERS):
        states = [s0, s1]
        offset = 0
        for _i in range(STEPS):
            s = sum(mixed(h, W[offset + j]) for j, h in enumerate(states))
            offset += len(states)
            states.append(s)
        s0, s1 = s1, sum(states[-STEPS:])
    out = jnp.maximum(s1 @ params["proj_w"].T + params["proj_b"][0], 0.0)
    return out @ ent_emb.T


# ----------------------------------------------------------------------- main
if __name__ == "__main__":
    key = jax.random.PRNGKey(0)
    k_ent, k_rel, k_pw, k_pb, k_alpha, k_x1, k_x2 = jax.random.split(key, 7)

    params = {
        # nn.Embedding default N(0,1) then *= init_size
        "ent_emb": jax.random.normal(k_ent, (SIZES[0], EMB_DIM),
                                     jnp.float32) * INIT_SIZE,
        "rel_emb": jax.random.normal(k_rel, (SIZES[1], EMB_DIM),
                                     jnp.float32) * INIT_SIZE,
        # nn.Linear(emb_dim, emb_dim)
        "proj_w": jax.random.normal(k_pw, (EMB_DIM, EMB_DIM),
                                    jnp.float32) * (1.0 / jnp.sqrt(EMB_DIM)),
        "proj_b": (jax.random.normal(k_pb, (1, EMB_DIM), jnp.float32)
                   * (1.0 / jnp.sqrt(EMB_DIM))),
        # alphas_normal = 0.001 * randn(k, num_ops)
        "alphas_normal": 0.001 * jax.random.normal(
            k_alpha, (K_EDGES, NUM_OPS), jnp.float32),
    }

    # query triples (lhs_idx, rel_idx, rhs_idx)
    ent_ids = jax.random.randint(k_x1, (BATCH, 2), 0, SIZES[0], jnp.int32)
    rel_ids = jax.random.randint(k_x2, (BATCH, 1), 0, SIZES[1], jnp.int32)
    x = jnp.concatenate([ent_ids[:, :1], rel_ids, ent_ids[:, 1:]], axis=1)

    # one-time param prep (E transpose + bf16 cast, W^T, softmax(alphas))
    arrays, meta = prepare_params(params, batch=BATCH)
    forward = make_network_forward(meta)

    scores, (lhs, rel, rhs) = forward(arrays, x)
    jax.block_until_ready(scores)

    ref = reference_forward(params, x)
    assert scores.shape == (BATCH, SIZES[0])
    assert lhs.shape == rel.shape == rhs.shape == (BATCH, EMB_DIM)
    # tolerance accounts for the bf16 streaming of the entity table in the
    # scoring matmul (q stays f32, f32 accumulation); the reference is pure f32.
    assert jnp.allclose(scores, ref, atol=2e-5, rtol=2e-2), (
        float(jnp.max(jnp.abs(scores - ref))))

    print("KERNEL_OK")
</pallas_src>

<mosaic_0001>
module attributes {stable_mosaic.version = 11 : i64} {
  func.func @_query_kernel(%arg0: memref<56xf32, #tpu.memory_space<smem>>, %arg1: memref<8x32xf32, #tpu.memory_space<vmem>>, %arg2: memref<8x32xf32, #tpu.memory_space<vmem>>, %arg3: memref<32x32xf32, #tpu.memory_space<vmem>>, %arg4: memref<1x32xf32, #tpu.memory_space<vmem>>, %arg5: memref<8x32xf32, #tpu.memory_space<vmem>>) attributes {dimension_semantics = [], scalar_prefetch = 0 : i64, scratch_operands = 0 : i64, tpu.core_type = #tpu.core_type<tc>} {
    %c0 = arith.constant 0 : index
    %c0_0 = arith.constant 0 : index
    %0 = vector.load %arg1[%c0, %c0_0] : memref<8x32xf32, #tpu.memory_space<vmem>>, vector<8x32xf32>
    %c0_1 = arith.constant 0 : index
    %c0_2 = arith.constant 0 : index
    %1 = vector.load %arg2[%c0_1, %c0_2] : memref<8x32xf32, #tpu.memory_space<vmem>>, vector<8x32xf32>
    %cst = arith.constant 0.000000e+00 : f32
    %2 = vector.broadcast %cst : f32 to vector<8x32xf32>
    %3 = arith.maximumf %0, %2 : vector<8x32xf32>
    %4 = math.tanh %0 : vector<8x32xf32>
    %cst_3 = arith.constant 0.000000e+00 : f32
    %5 = vector.broadcast %cst_3 : f32 to vector<8x32xf32>
    %6 = arith.maximumf %1, %5 : vector<8x32xf32>
    %7 = math.tanh %1 : vector<8x32xf32>
    %c1 = arith.constant 1 : index
    %8 = memref.load %arg0[%c1] : memref<56xf32, #tpu.memory_space<smem>>
    %9 = vector.broadcast %8 : f32 to vector<8x32xf32>
    %10 = arith.mulf %9, %0 : vector<8x32xf32>
    %c2 = arith.constant 2 : index
    %11 = memref.load %arg0[%c2] : memref<56xf32, #tpu.memory_space<smem>>
    %12 = vector.broadcast %11 : f32 to vector<8x32xf32>
    %13 = arith.mulf %12, %3 : vector<8x32xf32>
    %14 = arith.addf %10, %13 : vector<8x32xf32>
    %c3 = arith.constant 3 : index
    %15 = memref.load %arg0[%c3] : memref<56xf32, #tpu.memory_space<smem>>
    %16 = vector.broadcast %15 : f32 to vector<8x32xf32>
    %17 = arith.mulf %16, %4 : vector<8x32xf32>
    %18 = arith.addf %14, %17 : vector<8x32xf32>
    %c5 = arith.constant 5 : index
    %19 = memref.load %arg0[%c5] : memref<56xf32, #tpu.memory_space<smem>>
    %20 = vector.broadcast %19 : f32 to vector<8x32xf32>
    %21 = arith.mulf %20, %1 : vector<8x32xf32>
    %c6 = arith.constant 6 : index
    %22 = memref.load %arg0[%c6] : memref<56xf32, #tpu.memory_space<smem>>
    %23 = vector.broadcast %22 : f32 to vector<8x32xf32>
    %24 = arith.mulf %23, %6 : vector<8x32xf32>
    %25 = arith.addf %21, %24 : vector<8x32xf32>
    %c7 = arith.constant 7 : index
    %26 = memref.load %arg0[%c7] : memref<56xf32, #tpu.memory_space<smem>>
    %27 = vector.broadcast %26 : f32 to vector<8x32xf32>
    %28 = arith.mulf %27, %7 : vector<8x32xf32>
    %29 = arith.addf %25, %28 : vector<8x32xf32>
    %30 = arith.addf %18, %29 : vector<8x32xf32>
    %cst_4 = arith.constant 0.000000e+00 : f32
    %31 = vector.broadcast %cst_4 : f32 to vector<8x32xf32>
    %32 = arith.maximumf %30, %31 : vector<8x32xf32>
    %33 = math.tanh %30 : vector<8x32xf32>
    %c9 = arith.constant 9 : index
    %34 = memref.load %arg0[%c9] : memref<56xf32, #tpu.memory_space<smem>>
    %35 = vector.broadcast %34 : f32 to vector<8x32xf32>
    %36 = arith.mulf %35, %0 : vector<8x32xf32>
    %c10 = arith.constant 10 : index
    %37 = memref.load %arg0[%c10] : memref<56xf32, #tpu.memory_space<smem>>
    %38 = vector.broadcast %37 : f32 to vector<8x32xf32>
    %39 = arith.mulf %38, %3 : vector<8x32xf32>
    %40 = arith.addf %36, %39 : vector<8x32xf32>
    %c11 = arith.constant 11 : index
    %41 = memref.load %arg0[%c11] : memref<56xf32, #tpu.memory_space<smem>>
    %42 = vector.broadcast %41 : f32 to vector<8x32xf32>
    %43 = arith.mulf %42, %4 : vector<8x32xf32>
    %44 = arith.addf %40, %43 : vector<8x32xf32>
    %c13 = arith.constant 13 : index
    %45 = memref.load %arg0[%c13] : memref<56xf32, #tpu.memory_space<smem>>
    %46 = vector.broadcast %45 : f32 to vector<8x32xf32>
    %47 = arith.mulf %46, %1 : vector<8x32xf32>
    %c14 = arith.constant 14 : index
    %48 = memref.load %arg0[%c14] : memref<56xf32, #tpu.memory_space<smem>>
    %49 = vector.broadcast %48 : f32 to vector<8x32xf32>
    %50 = arith.mulf %49, %6 : vector<8x32xf32>
    %51 = arith.addf %47, %50 : vector<8x32xf32>
    %c15 = arith.constant 15 : index
    %52 = memref.load %arg0[%c15] : memref<56xf32, #tpu.memory_space<smem>>
    %53 = vector.broadcast %52 : f32 to vector<8x32xf32>
    %54 = arith.mulf %53, %7 : vector<8x32xf32>
    %55 = arith.addf %51, %54 : vector<8x32xf32>
    %56 = arith.addf %44, %55 : vector<8x32xf32>
    %c17 = arith.constant 17 : index
    %57 = memref.load %arg0[%c17] : memref<56xf32, #tpu.memory_space<smem>>
    %58 = vector.broadcast %57 : f32 to vector<8x32xf32>
    %59 = arith.mulf %58, %30 : vector<8x32xf32>
    %c18 = arith.constant 18 : index
    %60 = memref.load %arg0[%c18] : memref<56xf32, #tpu.memory_space<smem>>
    %61 = vector.broadcast %60 : f32 to vector<8x32xf32>
    %62 = arith.mulf %61, %32 : vector<8x32xf32>
    %63 = arith.addf %59, %62 : vector<8x32xf32>
    %c19 = arith.constant 19 : index
    %64 = memref.load %arg0[%c19] : memref<56xf32, #tpu.memory_space<smem>>
    %65 = vector.broadcast %64 : f32 to vector<8x32xf32>
    %66 = arith.mulf %65, %33 : vector<8x32xf32>
    %67 = arith.addf %63, %66 : vector<8x32xf32>
    %68 = arith.addf %56, %67 : vector<8x32xf32>
    %cst_5 = arith.constant 0.000000e+00 : f32
    %69 = vector.broadcast %cst_5 : f32 to vector<8x32xf32>
    %70 = arith.maximumf %68, %69 : vector<8x32xf32>
    %71 = math.tanh %68 : vector<8x32xf32>
    %c21 = arith.constant 21 : index
    %72 = memref.load %arg0[%c21] : memref<56xf32, #tpu.memory_space<smem>>
    %73 = vector.broadcast %72 : f32 to vector<8x32xf32>
    %74 = arith.mulf %73, %0 : vector<8x32xf32>
    %c22 = arith.constant 22 : index
    %75 = memref.load %arg0[%c22] : memref<56xf32, #tpu.memory_space<smem>>
    %76 = vector.broadcast %75 : f32 to vector<8x32xf32>
    %77 = arith.mulf %76, %3 : vector<8x32xf32>
    %78 = arith.addf %74, %77 : vector<8x32xf32>
    %c23 = arith.constant 23 : index
    %79 = memref.load %arg0[%c23] : memref<56xf32, #tpu.memory_space<smem>>
    %80 = vector.broadcast %79 : f32 to vector<8x32xf32>
    %81 = arith.mulf %80, %4 : vector<8x32xf32>
    %82 = arith.addf %78, %81 : vector<8x32xf32>
    %c25 = arith.constant 25 : index
    %83 = memref.load %arg0[%c25] : memref<56xf32, #tpu.memory_space<smem>>
    %84 = vector.broadcast %83 : f32 to vector<8x32xf32>
    %85 = arith.mulf %84, %1 : vector<8x32xf32>
    %c26 = arith.constant 26 : index
    %86 = memref.load %arg0[%c26] : memref<56xf32, #tpu.memory_space<smem>>
    %87 = vector.broadcast %86 : f32 to vector<8x32xf32>
    %88 = arith.mulf %87, %6 : vector<8x32xf32>
    %89 = arith.addf %85, %88 : vector<8x32xf32>
    %c27 = arith.constant 27 : index
    %90 = memref.load %arg0[%c27] : memref<56xf32, #tpu.memory_space<smem>>
    %91 = vector.broadcast %90 : f32 to vector<8x32xf32>
    %92 = arith.mulf %91, %7 : vector<8x32xf32>
    %93 = arith.addf %89, %92 : vector<8x32xf32>
    %94 = arith.addf %82, %93 : vector<8x32xf32>
    %c29 = arith.constant 29 : index
    %95 = memref.load %arg0[%c29] : memref<56xf32, #tpu.memory_space<smem>>
    %96 = vector.broadcast %95 : f32 to vector<8x32xf32>
    %97 = arith.mulf %96, %30 : vector<8x32xf32>
    %c30 = arith.constant 30 : index
    %98 = memref.load %arg0[%c30] : memref<56xf32, #tpu.memory_space<smem>>
    %99 = vector.broadcast %98 : f32 to vector<8x32xf32>
    %100 = arith.mulf %99, %32 : vector<8x32xf32>
    %101 = arith.addf %97, %100 : vector<8x32xf32>
    %c31 = arith.constant 31 : index
    %102 = memref.load %arg0[%c31] : memref<56xf32, #tpu.memory_space<smem>>
    %103 = vector.broadcast %102 : f32 to vector<8x32xf32>
    %104 = arith.mulf %103, %33 : vector<8x32xf32>
    %105 = arith.addf %101, %104 : vector<8x32xf32>
    %106 = arith.addf %94, %105 : vector<8x32xf32>
    %c33 = arith.constant 33 : index
    %107 = memref.load %arg0[%c33] : memref<56xf32, #tpu.memory_space<smem>>
    %108 = vector.broadcast %107 : f32 to vector<8x32xf32>
    %109 = arith.mulf %108, %68 : vector<8x32xf32>
    %c34 = arith.constant 34 : index
    %110 = memref.load %arg0[%c34] : memref<56xf32, #tpu.memory_space<smem>>
    %111 = vector.broadcast %110 : f32 to vector<8x32xf32>
    %112 = arith.mulf %111, %70 : vector<8x32xf32>
    %113 = arith.addf %109, %112 : vector<8x32xf32>
    %c35 = arith.constant 35 : index
    %114 = memref.load %arg0[%c35] : memref<56xf32, #tpu.memory_space<smem>>
    %115 = vector.broadcast %114 : f32 to vector<8x32xf32>
    %116 = arith.mulf %115, %71 : vector<8x32xf32>
    %117 = arith.addf %113, %116 : vector<8x32xf32>
    %118 = arith.addf %106, %117 : vector<8x32xf32>
    %cst_6 = arith.constant 0.000000e+00 : f32
    %119 = vector.broadcast %cst_6 : f32 to vector<8x32xf32>
    %120 = arith.maximumf %118, %119 : vector<8x32xf32>
    %121 = math.tanh %118 : vector<8x32xf32>
    %c37 = arith.constant 37 : index
    %122 = memref.load %arg0[%c37] : memref<56xf32, #tpu.memory_space<smem>>
    %123 = vector.broadcast %122 : f32 to vector<8x32xf32>
    %124 = arith.mulf %123, %0 : vector<8x32xf32>
    %c38 = arith.constant 38 : index
    %125 = memref.load %arg0[%c38] : memref<56xf32, #tpu.memory_space<smem>>
    %126 = vector.broadcast %125 : f32 to vector<8x32xf32>
    %127 = arith.mulf %126, %3 : vector<8x32xf32>
    %128 = arith.addf %124, %127 : vector<8x32xf32>
    %c39 = arith.constant 39 : index
    %129 = memref.load %arg0[%c39] : memref<56xf32, #tpu.memory_space<smem>>
    %130 = vector.broadcast %129 : f32 to vector<8x32xf32>
    %131 = arith.mulf %130, %4 : vector<8x32xf32>
    %132 = arith.addf %128, %131 : vector<8x32xf32>
    %c41 = arith.constant 41 : index
    %133 = memref.load %arg0[%c41] : memref<56xf32, #tpu.memory_space<smem>>
    %134 = vector.broadcast %133 : f32 to vector<8x32xf32>
    %135 = arith.mulf %134, %1 : vector<8x32xf32>
    %c42 = arith.constant 42 : index
    %136 = memref.load %arg0[%c42] : memref<56xf32, #tpu.memory_space<smem>>
    %137 = vector.broadcast %136 : f32 to vector<8x32xf32>
    %138 = arith.mulf %137, %6 : vector<8x32xf32>
    %139 = arith.addf %135, %138 : vector<8x32xf32>
    %c43 = arith.constant 43 : index
    %140 = memref.load %arg0[%c43] : memref<56xf32, #tpu.memory_space<smem>>
    %141 = vector.broadcast %140 : f32 to vector<8x32xf32>
    %142 = arith.mulf %141, %7 : vector<8x32xf32>
    %143 = arith.addf %139, %142 : vector<8x32xf32>
    %144 = arith.addf %132, %143 : vector<8x32xf32>
    %c45 = arith.constant 45 : index
    %145 = memref.load %arg0[%c45] : memref<56xf32, #tpu.memory_space<smem>>
    %146 = vector.broadcast %145 : f32 to vector<8x32xf32>
    %147 = arith.mulf %146, %30 : vector<8x32xf32>
    %c46 = arith.constant 46 : index
    %148 = memref.load %arg0[%c46] : memref<56xf32, #tpu.memory_space<smem>>
    %149 = vector.broadcast %148 : f32 to vector<8x32xf32>
    %150 = arith.mulf %149, %32 : vector<8x32xf32>
    %151 = arith.addf %147, %150 : vector<8x32xf32>
    %c47 = arith.constant 47 : index
    %152 = memref.load %arg0[%c47] : memref<56xf32, #tpu.memory_space<smem>>
    %153 = vector.broadcast %152 : f32 to vector<8x32xf32>
    %154 = arith.mulf %153, %33 : vector<8x32xf32>
    %155 = arith.addf %151, %154 : vector<8x32xf32>
    %156 = arith.addf %144, %155 : vector<8x32xf32>
    %c49 = arith.constant 49 : index
    %157 = memref.load %arg0[%c49] : memref<56xf32, #tpu.memory_space<smem>>
    %158 = vector.broadcast %157 : f32 to vector<8x32xf32>
    %159 = arith.mulf %158, %68 : vector<8x32xf32>
    %c50 = arith.constant 50 : index
    %160 = memref.load %arg0[%c50] : memref<56xf32, #tpu.memory_space<smem>>
    %161 = vector.broadcast %160 : f32 to vector<8x32xf32>
    %162 = arith.mulf %161, %70 : vector<8x32xf32>
    %163 = arith.addf %159, %162 : vector<8x32xf32>
    %c51 = arith.constant 51 : index
    %164 = memref.load %arg0[%c51] : memref<56xf32, #tpu.memory_space<smem>>
    %165 = vector.broadcast %164 : f32 to vector<8x32xf32>
    %166 = arith.mulf %165, %71 : vector<8x32xf32>
    %167 = arith.addf %163, %166 : vector<8x32xf32>
    %168 = arith.addf %156, %167 : vector<8x32xf32>
    %c53 = arith.constant 53 : index
    %169 = memref.load %arg0[%c53] : memref<56xf32, #tpu.memory_space<smem>>
    %170 = vector.broadcast %169 : f32 to vector<8x32xf32>
    %171 = arith.mulf %170, %118 : vector<8x32xf32>
    %c54 = arith.constant 54 : index
    %172 = memref.load %arg0[%c54] : memref<56xf32, #tpu.memory_space<smem>>
    %173 = vector.broadcast %172 : f32 to vector<8x32xf32>
    %174 = arith.mulf %173, %120 : vector<8x32xf32>
    %175 = arith.addf %171, %174 : vector<8x32xf32>
    %c55 = arith.constant 55 : index
    %176 = memref.load %arg0[%c55] : memref<56xf32, #tpu.memory_space<smem>>
    %177 = vector.broadcast %176 : f32 to vector<8x32xf32>
    %178 = arith.mulf %177, %121 : vector<8x32xf32>
    %179 = arith.addf %175, %178 : vector<8x32xf32>
    %180 = arith.addf %168, %179 : vector<8x32xf32>
    %181 = arith.addf %30, %68 : vector<8x32xf32>
    %182 = arith.addf %181, %118 : vector<8x32xf32>
    %183 = arith.addf %182, %180 : vector<8x32xf32>
    %cst_7 = arith.constant 0.000000e+00 : f32
    %184 = vector.broadcast %cst_7 : f32 to vector<8x32xf32>
    %185 = arith.maximumf %1, %184 : vector<8x32xf32>
    %186 = math.tanh %1 : vector<8x32xf32>
    %cst_8 = arith.constant 0.000000e+00 : f32
    %187 = vector.broadcast %cst_8 : f32 to vector<8x32xf32>
    %188 = arith.maximumf %183, %187 : vector<8x32xf32>
    %189 = math.tanh %183 : vector<8x32xf32>
    %c1_9 = arith.constant 1 : index
    %190 = memref.load %arg0[%c1_9] : memref<56xf32, #tpu.memory_space<smem>>
    %191 = vector.broadcast %190 : f32 to vector<8x32xf32>
    %192 = arith.mulf %191, %1 : vector<8x32xf32>
    %c2_10 = arith.constant 2 : index
    %193 = memref.load %arg0[%c2_10] : memref<56xf32, #tpu.memory_space<smem>>
    %194 = vector.broadcast %193 : f32 to vector<8x32xf32>
    %195 = arith.mulf %194, %185 : vector<8x32xf32>
    %196 = arith.addf %192, %195 : vector<8x32xf32>
    %c3_11 = arith.constant 3 : index
    %197 = memref.load %arg0[%c3_11] : memref<56xf32, #tpu.memory_space<smem>>
    %198 = vector.broadcast %197 : f32 to vector<8x32xf32>
    %199 = arith.mulf %198, %186 : vector<8x32xf32>
    %200 = arith.addf %196, %199 : vector<8x32xf32>
    %c5_12 = arith.constant 5 : index
    %201 = memref.load %arg0[%c5_12] : memref<56xf32, #tpu.memory_space<smem>>
    %202 = vector.broadcast %201 : f32 to vector<8x32xf32>
    %203 = arith.mulf %202, %183 : vector<8x32xf32>
    %c6_13 = arith.constant 6 : index
    %204 = memref.load %arg0[%c6_13] : memref<56xf32, #tpu.memory_space<smem>>
    %205 = vector.broadcast %204 : f32 to vector<8x32xf32>
    %206 = arith.mulf %205, %188 : vector<8x32xf32>
    %207 = arith.addf %203, %206 : vector<8x32xf32>
    %c7_14 = arith.constant 7 : index
    %208 = memref.load %arg0[%c7_14] : memref<56xf32, #tpu.memory_space<smem>>
    %209 = vector.broadcast %208 : f32 to vector<8x32xf32>
    %210 = arith.mulf %209, %189 : vector<8x32xf32>
    %211 = arith.addf %207, %210 : vector<8x32xf32>
    %212 = arith.addf %200, %211 : vector<8x32xf32>
    %cst_15 = arith.constant 0.000000e+00 : f32
    %213 = vector.broadcast %cst_15 : f32 to vector<8x32xf32>
    %214 = arith.maximumf %212, %213 : vector<8x32xf32>
    %215 = math.tanh %212 : vector<8x32xf32>
    %c9_16 = arith.constant 9 : index
    %216 = memref.load %arg0[%c9_16] : memref<56xf32, #tpu.memory_space<smem>>
    %217 = vector.broadcast %216 : f32 to vector<8x32xf32>
    %218 = arith.mulf %217, %1 : vector<8x32xf32>
    %c10_17 = arith.constant 10 : index
    %219 = memref.load %arg0[%c10_17] : memref<56xf32, #tpu.memory_space<smem>>
    %220 = vector.broadcast %219 : f32 to vector<8x32xf32>
    %221 = arith.mulf %220, %185 : vector<8x32xf32>
    %222 = arith.addf %218, %221 : vector<8x32xf32>
    %c11_18 = arith.constant 11 : index
    %223 = memref.load %arg0[%c11_18] : memref<56xf32, #tpu.memory_space<smem>>
    %224 = vector.broadcast %223 : f32 to vector<8x32xf32>
    %225 = arith.mulf %224, %186 : vector<8x32xf32>
    %226 = arith.addf %222, %225 : vector<8x32xf32>
    %c13_19 = arith.constant 13 : index
    %227 = memref.load %arg0[%c13_19] : memref<56xf32, #tpu.memory_space<smem>>
    %228 = vector.broadcast %227 : f32 to vector<8x32xf32>
    %229 = arith.mulf %228, %183 : vector<8x32xf32>
    %c14_20 = arith.constant 14 : index
    %230 = memref.load %arg0[%c14_20] : memref<56xf32, #tpu.memory_space<smem>>
    %231 = vector.broadcast %230 : f32 to vector<8x32xf32>
    %232 = arith.mulf %231, %188 : vector<8x32xf32>
    %233 = arith.addf %229, %232 : vector<8x32xf32>
    %c15_21 = arith.constant 15 : index
    %234 = memref.load %arg0[%c15_21] : memref<56xf32, #tpu.memory_space<smem>>
    %235 = vector.broadcast %234 : f32 to vector<8x32xf32>
    %236 = arith.mulf %235, %189 : vector<8x32xf32>
    %237 = arith.addf %233, %236 : vector<8x32xf32>
    %238 = arith.addf %226, %237 : vector<8x32xf32>
    %c17_22 = arith.constant 17 : index
    %239 = memref.load %arg0[%c17_22] : memref<56xf32, #tpu.memory_space<smem>>
    %240 = vector.broadcast %239 : f32 to vector<8x32xf32>
    %241 = arith.mulf %240, %212 : vector<8x32xf32>
    %c18_23 = arith.constant 18 : index
    %242 = memref.load %arg0[%c18_23] : memref<56xf32, #tpu.memory_space<smem>>
    %243 = vector.broadcast %242 : f32 to vector<8x32xf32>
    %244 = arith.mulf %243, %214 : vector<8x32xf32>
    %245 = arith.addf %241, %244 : vector<8x32xf32>
    %c19_24 = arith.constant 19 : index
    %246 = memref.load %arg0[%c19_24] : memref<56xf32, #tpu.memory_space<smem>>
    %247 = vector.broadcast %246 : f32 to vector<8x32xf32>
    %248 = arith.mulf %247, %215 : vector<8x32xf32>
    %249 = arith.addf %245, %248 : vector<8x32xf32>
    %250 = arith.addf %238, %249 : vector<8x32xf32>
    %cst_25 = arith.constant 0.000000e+00 : f32
    %251 = vector.broadcast %cst_25 : f32 to vector<8x32xf32>
    %252 = arith.maximumf %250, %251 : vector<8x32xf32>
    %253 = math.tanh %250 : vector<8x32xf32>
    %c21_26 = arith.constant 21 : index
    %254 = memref.load %arg0[%c21_26] : memref<56xf32, #tpu.memory_space<smem>>
    %255 = vector.broadcast %254 : f32 to vector<8x32xf32>
    %256 = arith.mulf %255, %1 : vector<8x32xf32>
    %c22_27 = arith.constant 22 : index
    %257 = memref.load %arg0[%c22_27] : memref<56xf32, #tpu.memory_space<smem>>
    %258 = vector.broadcast %257 : f32 to vector<8x32xf32>
    %259 = arith.mulf %258, %185 : vector<8x32xf32>
    %260 = arith.addf %256, %259 : vector<8x32xf32>
    %c23_28 = arith.constant 23 : index
    %261 = memref.load %arg0[%c23_28] : memref<56xf32, #tpu.memory_space<smem>>
    %262 = vector.broadcast %261 : f32 to vector<8x32xf32>
    %263 = arith.mulf %262, %186 : vector<8x32xf32>
    %264 = arith.addf %260, %263 : vector<8x32xf32>
    %c25_29 = arith.constant 25 : index
    %265 = memref.load %arg0[%c25_29] : memref<56xf32, #tpu.memory_space<smem>>
    %266 = vector.broadcast %265 : f32 to vector<8x32xf32>
    %267 = arith.mulf %266, %183 : vector<8x32xf32>
    %c26_30 = arith.constant 26 : index
    %268 = memref.load %arg0[%c26_30] : memref<56xf32, #tpu.memory_space<smem>>
    %269 = vector.broadcast %268 : f32 to vector<8x32xf32>
    %270 = arith.mulf %269, %188 : vector<8x32xf32>
    %271 = arith.addf %267, %270 : vector<8x32xf32>
    %c27_31 = arith.constant 27 : index
    %272 = memref.load %arg0[%c27_31] : memref<56xf32, #tpu.memory_space<smem>>
    %273 = vector.broadcast %272 : f32 to vector<8x32xf32>
    %274 = arith.mulf %273, %189 : vector<8x32xf32>
    %275 = arith.addf %271, %274 : vector<8x32xf32>
    %276 = arith.addf %264, %275 : vector<8x32xf32>
    %c29_32 = arith.constant 29 : index
    %277 = memref.load %arg0[%c29_32] : memref<56xf32, #tpu.memory_space<smem>>
    %278 = vector.broadcast %277 : f32 to vector<8x32xf32>
    %279 = arith.mulf %278, %212 : vector<8x32xf32>
    %c30_33 = arith.constant 30 : index
    %280 = memref.load %arg0[%c30_33] : memref<56xf32, #tpu.memory_space<smem>>
    %281 = vector.broadcast %280 : f32 to vector<8x32xf32>
    %282 = arith.mulf %281, %214 : vector<8x32xf32>
    %283 = arith.addf %279, %282 : vector<8x32xf32>
    %c31_34 = arith.constant 31 : index
    %284 = memref.load %arg0[%c31_34] : memref<56xf32, #tpu.memory_space<smem>>
    %285 = vector.broadcast %284 : f32 to vector<8x32xf32>
    %286 = arith.mulf %285, %215 : vector<8x32xf32>
    %287 = arith.addf %283, %286 : vector<8x32xf32>
    %288 = arith.addf %276, %287 : vector<8x32xf32>
    %c33_35 = arith.constant 33 : index
    %289 = memref.load %arg0[%c33_35] : memref<56xf32, #tpu.memory_space<smem>>
    %290 = vector.broadcast %289 : f32 to vector<8x32xf32>
    %291 = arith.mulf %290, %250 : vector<8x32xf32>
    %c34_36 = arith.constant 34 : index
    %292 = memref.load %arg0[%c34_36] : memref<56xf32, #tpu.memory_space<smem>>
    %293 = vector.broadcast %292 : f32 to vector<8x32xf32>
    %294 = arith.mulf %293, %252 : vector<8x32xf32>
    %295 = arith.addf %291, %294 : vector<8x32xf32>
    %c35_37 = arith.constant 35 : index
    %296 = memref.load %arg0[%c35_37] : memref<56xf32, #tpu.memory_space<smem>>
    %297 = vector.broadcast %296 : f32 to vector<8x32xf32>
    %298 = arith.mulf %297, %253 : vector<8x32xf32>
    %299 = arith.addf %295, %298 : vector<8x32xf32>
    %300 = arith.addf %288, %299 : vector<8x32xf32>
    %cst_38 = arith.constant 0.000000e+00 : f32
    %301 = vector.broadcast %cst_38 : f32 to vector<8x32xf32>
    %302 = arith.maximumf %300, %301 : vector<8x32xf32>
    %303 = math.tanh %300 : vector<8x32xf32>
    %c37_39 = arith.constant 37 : index
    %304 = memref.load %arg0[%c37_39] : memref<56xf32, #tpu.memory_space<smem>>
    %305 = vector.broadcast %304 : f32 to vector<8x32xf32>
    %306 = arith.mulf %305, %1 : vector<8x32xf32>
    %c38_40 = arith.constant 38 : index
    %307 = memref.load %arg0[%c38_40] : memref<56xf32, #tpu.memory_space<smem>>
    %308 = vector.broadcast %307 : f32 to vector<8x32xf32>
    %309 = arith.mulf %308, %185 : vector<8x32xf32>
    %310 = arith.addf %306, %309 : vector<8x32xf32>
    %c39_41 = arith.constant 39 : index
    %311 = memref.load %arg0[%c39_41] : memref<56xf32, #tpu.memory_space<smem>>
    %312 = vector.broadcast %311 : f32 to vector<8x32xf32>
    %313 = arith.mulf %312, %186 : vector<8x32xf32>
    %314 = arith.addf %310, %313 : vector<8x32xf32>
    %c41_42 = arith.constant 41 : index
    %315 = memref.load %arg0[%c41_42] : memref<56xf32, #tpu.memory_space<smem>>
    %316 = vector.broadcast %315 : f32 to vector<8x32xf32>
    %317 = arith.mulf %316, %183 : vector<8x32xf32>
    %c42_43 = arith.constant 42 : index
    %318 = memref.load %arg0[%c42_43] : memref<56xf32, #tpu.memory_space<smem>>
    %319 = vector.broadcast %318 : f32 to vector<8x32xf32>
    %320 = arith.mulf %319, %188 : vector<8x32xf32>
    %321 = arith.addf %317, %320 : vector<8x32xf32>
    %c43_44 = arith.constant 43 : index
    %322 = memref.load %arg0[%c43_44] : memref<56xf32, #tpu.memory_space<smem>>
    %323 = vector.broadcast %322 : f32 to vector<8x32xf32>
    %324 = arith.mulf %323, %189 : vector<8x32xf32>
    %325 = arith.addf %321, %324 : vector<8x32xf32>
    %326 = arith.addf %314, %325 : vector<8x32xf32>
    %c45_45 = arith.constant 45 : index
    %327 = memref.load %arg0[%c45_45] : memref<56xf32, #tpu.memory_space<smem>>
    %328 = vector.broadcast %327 : f32 to vector<8x32xf32>
    %329 = arith.mulf %328, %212 : vector<8x32xf32>
    %c46_46 = arith.constant 46 : index
    %330 = memref.load %arg0[%c46_46] : memref<56xf32, #tpu.memory_space<smem>>
    %331 = vector.broadcast %330 : f32 to vector<8x32xf32>
    %332 = arith.mulf %331, %214 : vector<8x32xf32>
    %333 = arith.addf %329, %332 : vector<8x32xf32>
    %c47_47 = arith.constant 47 : index
    %334 = memref.load %arg0[%c47_47] : memref<56xf32, #tpu.memory_space<smem>>
    %335 = vector.broadcast %334 : f32 to vector<8x32xf32>
    %336 = arith.mulf %335, %215 : vector<8x32xf32>
    %337 = arith.addf %333, %336 : vector<8x32xf32>
    %338 = arith.addf %326, %337 : vector<8x32xf32>
    %c49_48 = arith.constant 49 : index
    %339 = memref.load %arg0[%c49_48] : memref<56xf32, #tpu.memory_space<smem>>
    %340 = vector.broadcast %339 : f32 to vector<8x32xf32>
    %341 = arith.mulf %340, %250 : vector<8x32xf32>
    %c50_49 = arith.constant 50 : index
    %342 = memref.load %arg0[%c50_49] : memref<56xf32, #tpu.memory_space<smem>>
    %343 = vector.broadcast %342 : f32 to vector<8x32xf32>
    %344 = arith.mulf %343, %252 : vector<8x32xf32>
    %345 = arith.addf %341, %344 : vector<8x32xf32>
    %c51_50 = arith.constant 51 : index
    %346 = memref.load %arg0[%c51_50] : memref<56xf32, #tpu.memory_space<smem>>
    %347 = vector.broadcast %346 : f32 to vector<8x32xf32>
    %348 = arith.mulf %347, %253 : vector<8x32xf32>
    %349 = arith.addf %345, %348 : vector<8x32xf32>
    %350 = arith.addf %338, %349 : vector<8x32xf32>
    %c53_51 = arith.constant 53 : index
    %351 = memref.load %arg0[%c53_51] : memref<56xf32, #tpu.memory_space<smem>>
    %352 = vector.broadcast %351 : f32 to vector<8x32xf32>
    %353 = arith.mulf %352, %300 : vector<8x32xf32>
    %c54_52 = arith.constant 54 : index
    %354 = memref.load %arg0[%c54_52] : memref<56xf32, #tpu.memory_space<smem>>
    %355 = vector.broadcast %354 : f32 to vector<8x32xf32>
    %356 = arith.mulf %355, %302 : vector<8x32xf32>
    %357 = arith.addf %353, %356 : vector<8x32xf32>
    %c55_53 = arith.constant 55 : index
    %358 = memref.load %arg0[%c55_53] : memref<56xf32, #tpu.memory_space<smem>>
    %359 = vector.broadcast %358 : f32 to vector<8x32xf32>
    %360 = arith.mulf %359, %303 : vector<8x32xf32>
    %361 = arith.addf %357, %360 : vector<8x32xf32>
    %362 = arith.addf %350, %361 : vector<8x32xf32>
    %363 = arith.addf %212, %250 : vector<8x32xf32>
    %364 = arith.addf %363, %300 : vector<8x32xf32>
    %365 = arith.addf %364, %362 : vector<8x32xf32>
    %c0_54 = arith.constant 0 : index
    %c0_55 = arith.constant 0 : index
    %366 = vector.load %arg3[%c0_54, %c0_55] : memref<32x32xf32, #tpu.memory_space<vmem>>, vector<32x32xf32>
    %cst_56 = arith.constant dense<0.000000e+00> : vector<8x32xf32>
    %367 = tpu.matmul %365, %366, %cst_56 {dimension_numbers = #tpu.dot_dimension_numbers<[1], [0], [0], [1], [0, 0, 1, 1], [], []>} : vector<8x32xf32>, vector<32x32xf32>, vector<8x32xf32> -> vector<8x32xf32>
    %c0_57 = arith.constant 0 : index
    %c0_58 = arith.constant 0 : index
    %368 = vector.load %arg4[%c0_57, %c0_58] : memref<1x32xf32, #tpu.memory_space<vmem>>, vector<1x32xf32>
    %369 = vector.broadcast %368 : vector<1x32xf32> to vector<8x32xf32>
    %370 = arith.addf %367, %369 : vector<8x32xf32>
    %cst_59 = arith.constant 0.000000e+00 : f32
    %371 = vector.broadcast %cst_59 : f32 to vector<8x32xf32>
    %372 = arith.maximumf %370, %371 : vector<8x32xf32>
    %c0_60 = arith.constant 0 : index
    %c0_61 = arith.constant 0 : index
    %373 = vector.load %arg5[%c0_60, %c0_61] : memref<8x32xf32, #tpu.memory_space<vmem>>, vector<8x32xf32>
    tpu.vector_store %arg5[%c0_60, %c0_61], %372 {strides = array<i32>} : memref<8x32xf32, #tpu.memory_space<vmem>>, vector<8x32xf32>,
    return
  }
}

module attributes {stable_mosaic.version = 11 : i64} {
  func.func @_score_kernel(%arg0: i32, %arg1: memref<8x32xf32, #tpu.memory_space<vmem>>, %arg2: memref<32x256xbf16, #tpu.memory_space<vmem>>, %arg3: memref<8x256xf32, #tpu.memory_space<vmem>>) attributes {dimension_semantics = [#tpu.dimension_semantics<parallel>], iteration_bounds = array<i64: 1>, scalar_prefetch = 0 : i64, scratch_operands = 0 : i64, tpu.core_type = #tpu.core_type<tc>, window_params = [{pipeline_mode = #tpu.pipeline_mode<synchronous>, transform_indices = @transform_0, window_bounds = array<i64: 8, 32>}, {transform_indices = @transform_1, window_bounds = array<i64: 32, 256>}, {transform_indices = @transform_2, window_bounds = array<i64: 8, 256>}]} {
    %c0 = arith.constant 0 : index
    %c0_0 = arith.constant 0 : index
    %0 = vector.load %arg1[%c0, %c0_0] : memref<8x32xf32, #tpu.memory_space<vmem>>, vector<8x32xf32>
    %c0_1 = arith.constant 0 : index
    %c0_2 = arith.constant 0 : index
    %1 = vector.load %arg2[%c0_1, %c0_2] : memref<32x256xbf16, #tpu.memory_space<vmem>>, vector<32x256xbf16>
    %2 = arith.extf %1 : vector<32x256xbf16> to vector<32x256xf32>
    %cst = arith.constant dense<0.000000e+00> : vector<8x256xf32>
    %3 = tpu.matmul %0, %2, %cst {dimension_numbers = #tpu.dot_dimension_numbers<[1], [0], [0], [1], [0, 0, 1, 1], [], []>} : vector<8x32xf32>, vector<32x256xf32>, vector<8x256xf32> -> vector<8x256xf32>
    %c0_3 = arith.constant 0 : index
    %c0_4 = arith.constant 0 : index
    %4 = vector.load %arg3[%c0_3, %c0_4] : memref<8x256xf32, #tpu.memory_space<vmem>>, vector<8x256xf32>
    tpu.vector_store %arg3[%c0_3, %c0_4], %3 {strides = array<i32>} : memref<8x256xf32, #tpu.memory_space<vmem>>, vector<8x256xf32>,
    return
  }
  func.func @transform_0(%arg0: i32) -> (i32, i32) {
    %c0_i32 = arith.constant 0 : i32
    %c0_i32_0 = arith.constant 0 : i32
    %c0_i32_1 = arith.constant 0 : i32
    return %c0_i32, %c0_i32_0 : i32, i32
  }
  func.func @transform_1(%arg0: i32) -> (i32, i32) {
    %c0_i32 = arith.constant 0 : i32
    %c0_i32_0 = arith.constant 0 : i32
    return %c0_i32, %arg0 : i32, i32
  }
  func.func @transform_2(%arg0: i32) -> (i32, i32) {
    %c0_i32 = arith.constant 0 : i32
    %c0_i32_0 = arith.constant 0 : i32
    return %c0_i32, %arg0 : i32, i32
  }
}

</mosaic_0001>

<bundles_post_ra>
// kernel: forward.3
= control target key start
LH: loop header
LB: loop body
LE: loop exit
PB: predicated region body
PF: predicated region fallthrough
CT: control target
= control target key end

     0   :  { %v141_v6 = vmov 0.0   ;;  %s176_s0 = inlined_call_operand.vmem [shape: f32[8,32], index: 0, kind: input, shape index: {}]   ;;  %s177_s1 = inlined_call_operand.vmem [shape: bf16[32,256], index: 1, kind: input, shape index: {}]   ;;  %s178_s2 = inlined_call_operand.hbm [shape: f32[8,256], index: 2, kind: output, shape index: {}]  }
   0x1   :  { %v16_v0 = vld [vmem:[%s177_s1 + $0x18] sm:$0xff]  ;;  %v15_v1 = vld [vmem:[%s177_s1 + $0x10] sm:$0xff]  ;;  %v14_v2 = vld [vmem:[%s177_s1 + $0x8] sm:$0xff]  ;;  %93 = vmatprep.mubr.f32.mxu0 %v141_v6 }
   0x2   :  { %v24_v3 = vunpack.c.h.bf16 %v16_v0  ;;  %v23_v4 = vunpack.c.l.bf16 %v16_v0  ;;  %v22_v5 = vunpack.c.h.bf16 %v15_v1 }
   0x3   :  { %7 = vsyncpa [#allocation3], 0  ;;  %v21_v7 = vunpack.c.l.bf16 %v15_v1  ;;  %v13_v8 = vld [vmem:[%s177_s1] sm:$0xff]  ;;  %v20_v9 = vunpack.c.h.bf16 %v14_v2  ;;  %v19_v10 = vunpack.c.l.bf16 %v14_v2  ;;  %vm25_vm0 = vcmask 261120   ;;  %s142_s19 = smov [#allocation2]  }
   0x4   :  { %53 = vmatprep.subr.mxu0 %v24_v3  ;;  %v18_v11 = vunpack.c.h.bf16 %v13_v8  ;;  %v17_v12 = vunpack.c.l.bf16 %v13_v8  ;;  %v12_v13 = vld [vmem:[%s176_s0] sm:$0xff]  ;;  %s108_s1 = sshll.u32 %s142_s19, 4  ;;  %s109_s1 = int_to_ptr.vmem [resolvable:$true] %s108_s1 }
   0x5   :  { %54 = vmatpush1.msra.mxu0 %v23_v4  ;;  %s119_s20 = scalar_lea.vmem %s109_s1, 256  ;;  %p124_p1 = scmp.lt.s32.totalorder %s109_s1, %s109_s1 }
   0x6   :  { %55 = vmatprep.subr.mxu0 %v22_v5  ;;  %p120_p0 = scmp.ne.s32.totalorder %s109_s1, %s119_s20  ;;  %p125_p2 = scmp.lt.s32.totalorder %s119_s20, %s119_s20 }
   0x7   :  { %56 = vmatpush1.msra.mxu0 %v21_v7 }
   0x8   :  { %57 = vmatprep.subr.mxu0 %v20_v9  ;;  %p126_p3 = por %p125_p2, %p124_p1 }
   0x9   :  { %58 = vmatpush1.msra.mxu0 %v19_v10 }
   0xa   :  { %59 = vmatprep.subr.mxu0 %v18_v11  ;;  %p127_p4 = pnand %p126_p3, %p120_p0 }
   0xb   :  { %60 = vmatpush1.msra.mxu0 %v17_v12 }
   0xc   :  { %116 = vmatmul.mubr.msk.f32.vlgmr.msra.gmra.mxu0 %vm25_vm0, %v12_v13 }
  0xcc   :  { %v95_v14 = vpop.f32.mrf.mxu0 }
  0xcd   :  { %100 = vst [vmem:[#allocation2] sm:$0xff] %v95_v14 }
  0xce   :  { %v97_v15 = vpop.f32.mrf.mxu0 }
  0xcf   :  { %101 = vst [vmem:[#allocation2 + $0x8] sm:$0xff] %v97_v15 }
  0xd0   :  { %130 = shalt.err (!%p127_p4)
}
  0xd1   :  { %111 = dma.vmem_to_hbm [thread:$0]  %s109_s1, 256, %s178_s2, [#allocation3]  }
  0xd2   :  { %139 = dma.done.wait [#allocation3], 256  }
  0xd3   :  { %140 = vsyncadd [#allocation3], 4294967040 }
  0xd4   :  { %115 = vsyncpa [#allocation3], 1 }

// kernel: forward.2
= control target key start
LH: loop header
LB: loop body
LE: loop exit
PB: predicated region body
PF: predicated region fallthrough
CT: control target
= control target key end

     0   :  { %s873_s0 = inlined_call_operand.vmem [shape: f32[56], index: 0, kind: input, shape index: {}]   ;;  %s874_s1 = inlined_call_operand.vmem [shape: f32[8,32], index: 1, kind: input, shape index: {}]   ;;  %s875_s2 = inlined_call_operand.vmem [shape: f32[8,32], index: 2, kind: input, shape index: {}]   ;;  %s876_s3 = inlined_call_operand.vmem [shape: f32[32,32], index: 3, kind: input, shape index: {}]   ;;  %s877_s4 = inlined_call_operand.vmem [shape: f32[1,32], index: 4, kind: input, shape index: {}]   ;;  %s878_s5 = inlined_call_operand.vmem [shape: f32[8,32], index: 5, kind: output, shape index: {}]  }
   0x1   :  { %879 = sst [smem:[#allocation5_spill]] %s878_s5 }
   0x2   :  { %10 = vsyncpa [#allocation3], 0  ;;  %s17_s20 = sshll.u32 %s873_s0, 4  ;;  %s18_s20 = int_to_ptr.vmem [resolvable:$true] %s17_s20 }
   0x3   :  { %s476_s21 = scalar_lea.vmem %s18_s20, 16  ;;  %p481_p1 = scmp.lt.s32.totalorder %s18_s20, %s18_s20 }
   0x4   :  { %p477_p0 = scmp.ne.s32.totalorder %s18_s20, %s476_s21  ;;  %p482_p2 = scmp.lt.s32.totalorder %s476_s21, %s476_s21 }
   0x6   :  { %p483_p3 = por %p482_p2, %p481_p1 }
   0x8   :  { %p484_p4 = pnand %p483_p3, %p477_p0 }
   0xa   :  { %487 = shalt.err (!%p484_p4)
}
   0xb   :  { %s490_s22 = smov [#allocation2]  }
   0xc   :  { %20 = dma.vmem_to_smem %s18_s20, 16, %s490_s22, [#allocation3]  }
   0xd   :  { %488 = dma.done.wait [#allocation3], 16  }
   0xe   :  { %489 = vsyncadd [#allocation3], 4294967280 }
   0xf   :  { %32 = sfence }
  0x10   :  { %v306_v0 = vld [vmem:[%s876_s3 + $0x18] sm:$0xff]  ;;  %v491_v1 = vmov 0.0   ;;  %v305_v2 = vld [vmem:[%s876_s3 + $0x10] sm:$0xff]  ;;  %vm492_vm0 = vmmov 0   ;;  %v535_v3 = vld [vmem:[%s874_s1] sm:$0xff]  ;;  %s395_s30 = sld [smem:[#allocation2 + $0x1]] }
  0x11   :  { %444 = vmatprep.subr.mxu0 %v491_v1  ;;  %452 = vmatprep.mubr.msk.f32.mxu0 %vm492_vm0, %v491_v1  ;;  %v540_v4 = vld [vmem:[%s875_s2] sm:$0xff]  ;;  %458 = vtanh.f32 %v535_v3  ;;  %s396_s6 = sld [smem:[#allocation2 + $0x2]]  ;;  %v304_v5 = vld [vmem:[%s876_s3 + $0x8] sm:$0xff]  ;;  %v557_v7 = vmax.f32 %v535_v3, 0.0  ;;  %vm314_vm1 = vcmask 261120  }
  0x12   :  { %445 = vmatpush3.msra.mxu0 %v306_v0  ;;  %460 = vtanh.f32 %v540_v4  ;;  %s547_s9 = sld [smem:[#allocation2 + $0x3]]  ;;  %v303_v6 = vld [vmem:[%s876_s3] sm:$0xff]  ;;  %v562_v8 = vmax.f32 %v540_v4, 0.0 }
  0x13   :  { %446 = vmatprep.subr.mxu0 %v491_v1  ;;  %s549_s1 = sld [smem:[#allocation2 + $0x5]] }
  0x14   :  { %447 = vmatpush3.msra.mxu0 %v305_v2  ;;  %s554_s11 = sld [smem:[#allocation2 + $0x6]] }
  0x15   :  { %448 = vmatprep.subr.mxu0 %v491_v1  ;;  %s559_s12 = sld [smem:[#allocation2 + $0x7]] }
  0x16   :  { %449 = vmatpush3.msra.mxu0 %v304_v5  ;;  %v40_v9 = vstv %s395_s30  ;;  %s564_s13 = sld [smem:[#allocation2 + $0x9]] }
  0x17   :  { %450 = vmatprep.subr.mxu0 %v491_v1  ;;  %v43_v10 = vstv %s396_s6  ;;  %s566_s3 = sld [smem:[#allocation2 + $0xa]]  ;;  %v214_v11 = vmul.f32 %v40_v9, %v540_v4  ;;  %v41_v13 = vmul.f32 %v40_v9, %v535_v3 }
  0x18   :  { %451 = vmatpush3.msra.mxu0 %v303_v6  ;;  %v215_v12 = vmul.f32 %v43_v10, %v562_v8  ;;  %v44_v14 = vmul.f32 %v43_v10, %v557_v7  ;;  %s573_s14 = sld [smem:[#allocation2 + $0xd]]  ;;  %v47_v20 = vstv %s547_s9 }
  0x19   :  { %v51_v15 = vstv %s549_s1  ;;  %s579_s15 = sld [smem:[#allocation2 + $0xe]] }
  0x1a   :  { %v52_v16 = vmul.f32 %v51_v15, %v540_v4  ;;  %v54_v17 = vstv %s554_s11  ;;  %v216_v18 = vadd.f32 %v215_v12, %v214_v11  ;;  %s584_s16 = sld [smem:[#allocation2 + $0xb]]  ;;  %v45_v22 = vadd.f32 %v44_v14, %v41_v13 }
  0x1b   :  { %v55_v19 = vmul.f32 %v54_v17, %v562_v8  ;;  %v58_v23 = vstv %s559_s12  ;;  %s593_s17 = sld [smem:[#allocation2 + $0xf]] }
  0x1c   :  { %v65_v21 = vstv %s564_s13  ;;  %s599_s18 = sld [smem:[#allocation2 + $0x15]] }
  0x1d   :  { %v68_v24 = vstv %s566_s3  ;;  %v227_v25 = vmul.f32 %v65_v21, %v540_v4  ;;  %v56_v27 = vadd.f32 %v55_v19, %v52_v16  ;;  %s604_s19 = sld [smem:[#allocation2 + $0x16]]  ;;  %v66_v41 = vmul.f32 %v65_v21, %v535_v3 }
  0x1e   :  { %v591_v26 = vpop.eup %458  ;;  %v228_v28 = vmul.f32 %v68_v24, %v562_v8  ;;  %s606_s20 = sld [smem:[#allocation2 + $0x11]]  ;;  %v76_v35 = vstv %s573_s14  ;;  %v69_v42 = vmul.f32 %v68_v24, %v557_v7 }
  0x1f   :  { %v596_v29 = vpop.eup %460  ;;  %v48_v30 = vmul.f32 %v591_v26, %v47_v20  ;;  %v79_v36 = vstv %s579_s15  ;;  %s611_s21 = sld [smem:[#allocation2 + $0x17]]  ;;  %v77_v44 = vmul.f32 %v76_v35, %v540_v4 }
  0x20   :  { %v59_v31 = vmul.f32 %v596_v29, %v58_v23  ;;  %v217_v33 = vmul.f32 %v596_v29, %v47_v20  ;;  %v72_v37 = vstv %s584_s16  ;;  %s614_s22 = sld [smem:[#allocation2 + $0x12]]  ;;  %v229_v39 = vadd.f32 %v228_v28, %v227_v25 }
  0x21   :  { %v49_v32 = vadd.f32 %v48_v30, %v45_v22  ;;  %v230_v43 = vmul.f32 %v596_v29, %v72_v37  ;;  %v80_v45 = vmul.f32 %v79_v36, %v562_v8  ;;  %v83_v46 = vstv %s593_s17  ;;  %s631_s23 = sld [smem:[#allocation2 + $0x13]] }
  0x22   :  { %v60_v34 = vadd.f32 %v59_v31, %v56_v27  ;;  %v616_v38 = vadd.f32 %v217_v33, %v216_v18  ;;  %s633_s24 = sld [smem:[#allocation2 + $0x19]]  ;;  %v70_v48 = vadd.f32 %v69_v42, %v66_v41  ;;  %v73_v49 = vmul.f32 %v591_v26, %v72_v37 }
  0x23   :  { %v635_v47 = vadd.f32 %v230_v43, %v229_v39  ;;  %v102_v50 = vstv %s599_s18  ;;  %v105_v51 = vstv %s604_s19  ;;  %s640_s0 = sld [smem:[#allocation2 + $0x1a]]  ;;  %v81_v52 = vadd.f32 %v80_v45, %v77_v44 }
  0x24   :  { %v618_v40 = vadd.f32 %v60_v34, %v49_v32  ;;  %v84_v53 = vmul.f32 %v596_v29, %v83_v46  ;;  %s645_s25 = sld [smem:[#allocation2 + $0x1b]]  ;;  %v246_v54 = vmul.f32 %v102_v50, %v540_v4  ;;  %v247_v55 = vmul.f32 %v105_v51, %v562_v8 }
  0x25   :  { %v109_v57 = vstv %s611_s21  ;;  %s653_s26 = sld [smem:[#allocation2 + $0x1d]]  ;;  %v88_v58 = vstv %s606_s20  ;;  %v74_v62 = vadd.f32 %v73_v49, %v70_v48  ;;  %v103_v9 = vmul.f32 %v102_v50, %v535_v3 }
  0x26   :  { %462 = vtanh.f32 %v618_v40  ;;  %v650_v56 = vmax.f32 %v618_v40, 0.0  ;;  %v91_v59 = vstv %s614_s22  ;;  %s422_s27 = sld [smem:[#allocation2 + $0x25]]  ;;  %v248_v60 = vadd.f32 %v247_v55, %v246_v54 }
  0x27   :  { %v249_v61 = vmul.f32 %v596_v29, %v109_v57  ;;  %s423_s28 = sld [smem:[#allocation2 + $0x26]]  ;;  %v85_v63 = vadd.f32 %v84_v53, %v81_v52  ;;  %v89_v1 = vmul.f32 %v88_v58, %v618_v40  ;;  %v95_v6 = vstv %s631_s23 }
  0x28   :  { %s658_s29 = sld [smem:[#allocation2 + $0x27]]  ;;  %v92_v2 = vmul.f32 %v91_v59, %v650_v56  ;;  %v113_v18 = vstv %s633_s24  ;;  %v106_v33 = vmul.f32 %v105_v51, %v557_v7  ;;  %v110_v53 = vmul.f32 %v591_v26, %v109_v57 }
  0x29   :  { %v660_v0 = vadd.f32 %v249_v61, %v248_v60  ;;  %s668_s30 = sld [smem:[#allocation2 + $0x29]]  ;;  %v86_v5 = vadd.f32 %v85_v63, %v74_v62  ;;  %v116_v24 = vstv %s640_s0  ;;  %v114_v39 = vmul.f32 %v113_v18, %v540_v4 }
  0x2a   :  { %s670_s6 = sld [smem:[#allocation2 + $0x2a]]  ;;  %v93_v11 = vadd.f32 %v92_v2, %v89_v1  ;;  %v117_v44 = vmul.f32 %v116_v24, %v562_v8  ;;  %v120_v45 = vstv %s645_s25  ;;  %v107_v52 = vadd.f32 %v106_v33, %v103_v9 }
  0x2b   :  { %s672_s7 = sld [smem:[#allocation2 + $0x2b]]  ;;  %v121_v54 = vmul.f32 %v596_v29, %v120_v45 }
  0x2c   :  { %s676_s8 = sld [smem:[#allocation2 + $0x1e]]  ;;  %v151_v10 = vstv %s422_s27  ;;  %v111_v1 = vadd.f32 %v110_v53, %v107_v52 }
  0x2d   :  { %v152_v12 = vmul.f32 %v151_v10, %v535_v3  ;;  %v154_v13 = vstv %s423_s28  ;;  %v271_v14 = vmul.f32 %v151_v10, %v540_v4  ;;  %s692_s9 = sld [smem:[#allocation2 + $0x1f]] }
  0x2e   :  { %v155_v19 = vmul.f32 %v154_v13, %v557_v7  ;;  %v158_v20 = vstv %s658_s29  ;;  %v272_v21 = vmul.f32 %v154_v13, %v562_v8  ;;  %s699_s2 = sld [smem:[#allocation2 + $0x21]] }
  0x2f   :  { %v159_v3 = vmul.f32 %v591_v26, %v158_v20  ;;  %v162_v25 = vstv %s668_s30  ;;  %s708_s10 = sld [smem:[#allocation2 + $0x22]]  ;;  %v274_v7 = vmul.f32 %v596_v29, %v158_v20 }
  0x30   :  { %v156_v27 = vadd.f32 %v155_v19, %v152_v12  ;;  %v163_v28 = vmul.f32 %v162_v25, %v540_v4  ;;  %v165_v30 = vstv %s670_s6  ;;  %v273_v31 = vadd.f32 %v272_v21, %v271_v14  ;;  %s736_s13 = sld [smem:[#allocation2 + $0x23]] }
  0x31   :  { %v166_v34 = vmul.f32 %v165_v30, %v562_v8  ;;  %v169_v37 = vstv %s672_s7  ;;  %v125_v4 = vstv %s653_s26  ;;  %v118_v8 = vadd.f32 %v117_v44, %v114_v39  ;;  %s744_s3 = sld [smem:[#allocation2 + $0x2d]] }
  0x32   :  { %v160_v41 = vadd.f32 %v159_v3, %v156_v27  ;;  %v170_v42 = vmul.f32 %v596_v29, %v169_v37  ;;  %v128_v49 = vstv %s676_s8  ;;  %v722_v50 = vadd.f32 %v274_v7, %v273_v31  ;;  %s746_s16 = sld [smem:[#allocation2 + $0x2e]] }
  0x33   :  { %v680_v16 = vpop.eup %462  ;;  %v167_v48 = vadd.f32 %v166_v34, %v163_v28  ;;  %v126_v55 = vmul.f32 %v125_v4, %v618_v40  ;;  %v129_v60 = vmul.f32 %v128_v49, %v650_v56  ;;  %v132_v62 = vstv %s692_s9  ;;  %s753_s18 = sld [smem:[#allocation2 + $0x2f]] }
  0x34   :  { %v96_v22 = vmul.f32 %v680_v16, %v95_v6  ;;  %v137_v26 = vstv %s699_s2  ;;  %v122_v29 = vadd.f32 %v121_v54, %v118_v8  ;;  %s755_s19 = sld [smem:[#allocation2 + $0x31]] }
  0x35   :  { %v171_v51 = vadd.f32 %v170_v42, %v167_v48  ;;  %v140_v57 = vstv %s708_s10  ;;  %v130_v2 = vadd.f32 %v129_v60, %v126_v55  ;;  %s758_s21 = sld [smem:[#allocation2 + $0x32]] }
  0x36   :  { %v97_v32 = vadd.f32 %v96_v22, %v93_v11  ;;  %v123_v11 = vadd.f32 %v122_v29, %v111_v1  ;;  %v144_v13 = vstv %s736_s13  ;;  %s764_s27 = sld [smem:[#allocation2 + $0x33]] }
  0x37   :  { %v172_v61 = vadd.f32 %v171_v51, %v160_v41  ;;  %v174_v22 = vstv %s744_s3  ;;  %s766_s28 = sld [smem:[#allocation2 + $0x35]] }
  0x38   :  { %v714_v43 = vadd.f32 %v97_v32, %v86_v5  ;;  %v133_v5 = vmul.f32 %v680_v16, %v132_v62  ;;  %v177_v3 = vstv %s746_s16  ;;  %s768_s29 = sld [smem:[#allocation2 + $0x36]]  ;;  %v175_v31 = vmul.f32 %v174_v22, %v618_v40 }
  0x39   :  { %v178_v32 = vmul.f32 %v177_v3, %v650_v56  ;;  %v181_v33 = vstv %s753_s18  ;;  %s788_s5 = sld [smem:[#allocation2 + $0x37]] }
  0x3a   :  { %464 = vtanh.f32 %v714_v43  ;;  %v99_v63 = vmax.f32 %v714_v43, 0.0  ;;  %v138_v9 = vmul.f32 %v137_v26, %v714_v43  ;;  %v134_v12 = vadd.f32 %v133_v5, %v130_v2  ;;  %s880_s15 = sld [smem:[#allocation5_spill]] }
  0x3b   :  { %v186_v34 = vstv %s755_s19  ;;  %v189_v39 = vstv %s758_s21  ;;  %v179_v41 = vadd.f32 %v178_v32, %v175_v31  ;;  %v182_v42 = vmul.f32 %v680_v16, %v181_v33 }
  0x3c   :  { %v141_v10 = vmul.f32 %v140_v57, %v99_v63  ;;  %v135_v20 = vadd.f32 %v134_v12, %v123_v11  ;;  %v187_v7 = vmul.f32 %v186_v34, %v714_v43  ;;  %v190_v44 = vmul.f32 %v189_v39, %v99_v63 }
  0x3d   :  { %v193_v48 = vstv %s764_s27  ;;  %v198_v51 = vstv %s766_s28  ;;  %v183_v53 = vadd.f32 %v182_v42, %v179_v41  ;;  %v209_v2 = vadd.f32 %v714_v43, %v618_v40 }
  0x3e   :  { %v142_v14 = vadd.f32 %v141_v10, %v138_v9  ;;  %v201_v52 = vstv %s768_s29  ;;  %v191_v54 = vadd.f32 %v190_v44, %v187_v7 }
  0x3f   :  { %v184_v60 = vadd.f32 %v183_v53, %v172_v61  ;;  %v205_v1 = vstv %s788_s5 }
  0x47   :  { %v465_v19 = vpop.eup %464 }
  0x48   :  { %v145_v21 = vmul.f32 %v465_v19, %v144_v13  ;;  %v194_v8 = vmul.f32 %v465_v19, %v193_v48 }
  0x4a   :  { %v146_v27 = vadd.f32 %v145_v21, %v142_v14  ;;  %v195_v63 = vadd.f32 %v194_v8, %v191_v54 }
  0x4c   :  { %v147_v28 = vadd.f32 %v146_v27, %v135_v20  ;;  %v196_v9 = vadd.f32 %v195_v63, %v184_v60 }
  0x4e   :  { %466 = vtanh.f32 %v147_v28  ;;  %v148_v56 = vmax.f32 %v147_v28, 0.0  ;;  %v199_v55 = vmul.f32 %v198_v51, %v147_v28  ;;  %v210_v12 = vadd.f32 %v209_v2, %v147_v28 }
  0x50   :  { %v202_v16 = vmul.f32 %v201_v52, %v148_v56 }
  0x52   :  { %v203_v29 = vadd.f32 %v202_v16, %v199_v55 }
  0x5b   :  { %v467_v5 = vpop.eup %466 }
  0x5c   :  { %v206_v10 = vmul.f32 %v467_v5, %v205_v1 }
  0x5e   :  { %v207_v11 = vadd.f32 %v206_v10, %v203_v29 }
  0x60   :  { %v208_v14 = vadd.f32 %v207_v11, %v196_v9 }
  0x62   :  { %v211_v61 = vadd.f32 %v210_v12, %v208_v14 }
  0x64   :  { %v212_v19 = vmax.f32 %v211_v61, 0.0  ;;  %468 = vtanh.f32 %v211_v61  ;;  %v251_v20 = vmul.f32 %v211_v61, %v113_v18  ;;  %v276_v40 = vmul.f32 %v211_v61, %v162_v25 }
  0x65   :  { %v219_v28 = vmul.f32 %v211_v61, %v51_v15  ;;  %v232_v41 = vmul.f32 %v211_v61, %v76_v35 }
  0x66   :  { %v252_v43 = vmul.f32 %v212_v19, %v116_v24  ;;  %v277_v21 = vmul.f32 %v212_v19, %v165_v30  ;;  %v220_v32 = vmul.f32 %v212_v19, %v54_v17  ;;  %v233_v42 = vmul.f32 %v212_v19, %v79_v36 }
  0x68   :  { %v253_v27 = vadd.f32 %v252_v43, %v251_v20  ;;  %v278_v31 = vadd.f32 %v277_v21, %v276_v40  ;;  %v221_v7 = vadd.f32 %v220_v32, %v219_v28  ;;  %v234_v44 = vadd.f32 %v233_v42, %v232_v41 }
  0x71   :  { %v469_v18 = vpop.eup %468 }
  0x72   :  { %v222_v25 = vmul.f32 %v469_v18, %v58_v23  ;;  %v235_v24 = vmul.f32 %v469_v18, %v83_v46  ;;  %v254_v30 = vmul.f32 %v469_v18, %v120_v45  ;;  %v279_v15 = vmul.f32 %v469_v18, %v169_v37 }
  0x74   :  { %v223_v17 = vadd.f32 %v222_v25, %v221_v7  ;;  %v236_v35 = vadd.f32 %v235_v24, %v234_v44  ;;  %v255_v36 = vadd.f32 %v254_v30, %v253_v27  ;;  %v280_v56 = vadd.f32 %v279_v15, %v278_v31 }
  0x76   :  { %v224_v53 = vadd.f32 %v223_v17, %v616_v38  ;;  %v237_v54 = vadd.f32 %v236_v35, %v635_v47  ;;  %v256_v23 = vadd.f32 %v255_v36, %v660_v0  ;;  %v281_v46 = vadd.f32 %v280_v56, %v722_v50 }
  0x78   :  { %v225_v45 = vmax.f32 %v224_v53, 0.0  ;;  %470 = vtanh.f32 %v224_v53  ;;  %v282_v37 = vmul.f32 %v224_v53, %v174_v22  ;;  %v238_v16 = vmul.f32 %v224_v53, %v88_v58 }
  0x79   :  { %v257_v60 = vmul.f32 %v224_v53, %v125_v4 }
  0x7a   :  { %v283_v8 = vmul.f32 %v225_v45, %v177_v3  ;;  %v239_v38 = vmul.f32 %v225_v45, %v91_v59  ;;  %v258_v47 = vmul.f32 %v225_v45, %v128_v49 }
  0x7c   :  { %v284_v55 = vadd.f32 %v283_v8, %v282_v37  ;;  %v240_v0 = vadd.f32 %v239_v38, %v238_v16  ;;  %v259_v63 = vadd.f32 %v258_v47, %v257_v60 }
  0x85   :  { %v471_v50 = vpop.eup %470 }
  0x86   :  { %v241_v22 = vmul.f32 %v471_v50, %v95_v6  ;;  %v260_v3 = vmul.f32 %v471_v50, %v132_v62  ;;  %v285_v29 = vmul.f32 %v471_v50, %v181_v33 }
  0x88   :  { %v242_v58 = vadd.f32 %v241_v22, %v240_v0  ;;  %v261_v59 = vadd.f32 %v260_v3, %v259_v63  ;;  %v286_v4 = vadd.f32 %v285_v29, %v284_v55 }
  0x8a   :  { %v243_v2 = vadd.f32 %v242_v58, %v237_v54  ;;  %v262_v49 = vadd.f32 %v261_v59, %v256_v23  ;;  %v287_v5 = vadd.f32 %v286_v4, %v281_v46 }
  0x8c   :  { %472 = vtanh.f32 %v243_v2  ;;  %v300_v9 = vadd.f32 %v243_v2, %v224_v53  ;;  %v244_v10 = vmax.f32 %v243_v2, 0.0  ;;  %v263_v11 = vmul.f32 %v243_v2, %v137_v26 }
  0x8d   :  { %v288_v62 = vmul.f32 %v243_v2, %v186_v34 }
  0x8e   :  { %v264_v6 = vmul.f32 %v244_v10, %v140_v57  ;;  %v289_v33 = vmul.f32 %v244_v10, %v189_v39 }
  0x90   :  { %v265_v12 = vadd.f32 %v264_v6, %v263_v11  ;;  %v290_v14 = vadd.f32 %v289_v33, %v288_v62 }
  0x99   :  { %v473_v61 = vpop.eup %472 }
  0x9a   :  { %v266_v19 = vmul.f32 %v473_v61, %v144_v13  ;;  %v291_v20 = vmul.f32 %v473_v61, %v193_v48  ;;  %v437_v48 = vld [vmem:[%s877_s4] ss:$0 sm:$0xff] }
  0x9c   :  { %v267_v40 = vadd.f32 %v266_v19, %v265_v12  ;;  %v292_v43 = vadd.f32 %v291_v20, %v290_v14 }
  0x9e   :  { %v268_v21 = vadd.f32 %v267_v40, %v262_v49  ;;  %v293_v26 = vadd.f32 %v292_v43, %v287_v5 }
  0xa0   :  { %474 = vtanh.f32 %v268_v21  ;;  %v301_v27 = vadd.f32 %v300_v9, %v268_v21  ;;  %v269_v57 = vmax.f32 %v268_v21, 0.0  ;;  %v294_v31 = vmul.f32 %v268_v21, %v198_v51 }
  0xa2   :  { %v295_v34 = vmul.f32 %v269_v57, %v201_v52 }
  0xa4   :  { %v296_v39 = vadd.f32 %v295_v34, %v294_v31 }
  0xad   :  { %v475_v28 = vpop.eup %474 }
  0xae   :  { %v297_v32 = vmul.f32 %v475_v28, %v205_v1 }
  0xb0   :  { %v298_v41 = vadd.f32 %v297_v32, %v296_v39 }
  0xb2   :  { %v299_v42 = vadd.f32 %v298_v41, %v293_v26 }
  0xb4   :  { %v302_v13 = vadd.f32 %v301_v27, %v299_v42 }
  0xb6   :  { %453 = vmatmul.mubr.msk.f32.vlgmr.msra.gmra.mxu0 %vm314_vm1, %v302_v13 }
 0x176   :  { %v384_v7 = vpop.f32.mrf.mxu0 }
 0x177   :  { %v385_v44 = vadd.f32 %v437_v48, %v384_v7 }
 0x178   :  { %v454_v18 = vpop.f32.mrf.mxu0 }
 0x179   :  { %v388_v25 = vmax.f32 %v385_v44, 0.0 }
 0x17b   :  { %389 = vst.msk [vmem:[%s880_s15] sm:$0xff] %vm314_vm1, %v388_v25 }
 0x17c   :  { %394 = vsyncpa [#allocation3], 1 }

</bundles_post_ra>
